<compile_context>
chip_gen: v5e
topology: v5e:2x2
jax: 0.10.0
libtpu: 0.0.40
codegen_flags: <defaults>
</compile_context>

<pallas_src>
import jax
import jax.numpy as jnp
from jax import lax
from jax.experimental import pallas as pl
from jax.experimental.pallas import tpu as pltpu


def critic_mlp_kernel(x_ref, w1_ref, b1_ref, w2_ref, b2_ref, w3_ref, b3_ref,
                      out_ref):
    """Full MLP forward for one batch tile; batch lives on the lane axis.

    x_ref:  (TB, obs_dim)             obs tile in natural layout
    w1_ref: (H0, obs_dim)  b1_ref: (H0, 1)
    w2_ref: (H1, H0)       b2_ref: (H1, 1)
    w3_ref: (H1, 1)        b3_ref: (1, 1)
    out_ref: (1, TB)                  lane-dense output tile
    """
    x = x_ref[...]                                         # (TB, obs_dim)
    # Layer 1: contract on obs_dim of both operands -> (H0, TB).
    # Batch moves onto the lane axis here without any wrapper-side transpose.
    h = lax.dot_general(
        w1_ref[...], x,
        dimension_numbers=(((1,), (1,)), ((), ())),
        preferred_element_type=jnp.float32)
    h = jnp.tanh(h + b1_ref[...])                          # (H0, TB)
    # Layer 2: (H1, H0) @ (H0, TB) -> (H1, TB).
    h = jnp.tanh(
        jnp.dot(w2_ref[...], h, preferred_element_type=jnp.float32)
        + b2_ref[...])
    # Final (H1 -> 1) layer: VPU multiply + sublane (XLU) reduction, avoiding
    # a pathological 1-wide MXU matmul; result stays lane-dense.
    v = jnp.sum(h * w3_ref[...], axis=0, keepdims=True) + b3_ref[...]
    out_ref[...] = v.astype(out_ref.dtype)                 # (1, TB)


def _round_up(x, m):
    return ((x + m - 1) // m) * m


def _pick_batch_tile(B, max_tile=4096):
    """Lane-aligned batch tile.

    - small batches (<=256 after 128-alignment): one tile, no wasted EUP work
    - otherwise: cap at max_tile, and keep >= 2 grid steps so the "parallel"
      batch axis can be sharded across both TensorCores on v7x.
    """
    b128 = max(128, _round_up(B, 128))
    if b128 <= 256:
        return b128
    half = _round_up((b128 + 1) // 2, 128)
    return min(max_tile, half)


def critic_forward(obs, params, *, max_batch_tile=4096):
    """Pallas-backed Critic forward. Returns value of shape (B,)."""
    w1, b1, w2, b2, w3, b3 = params
    B, obs_dim = obs.shape
    H0 = w1.shape[1]
    H1 = w2.shape[1]

    batch_tile = _pick_batch_tile(B, max_batch_tile)
    grid = (pl.cdiv(B, batch_tile),)

    # Tiny one-time param re-layout (layout plumbing, not compute):
    # weights as (out, in) so the kernel computes W @ x; biases as columns.
    w1_t = jnp.transpose(w1)          # (H0, obs_dim)
    w2_t = jnp.transpose(w2)          # (H1, H0)
    b1_c = jnp.transpose(b1)          # (H0, 1)
    b2_c = jnp.transpose(b2)          # (H1, 1)
    w3_c = w3                         # (H1, 1)
    b3_c = b3                         # (1, 1)

    # Weights/biases are tiny (~tens of KiB): constant index_map keeps the
    # same block resident across all grid steps.
    const = lambda shape: pl.BlockSpec(shape, lambda i: (0, 0))

    out_1xB = pl.pallas_call(
        critic_mlp_kernel,
        out_shape=jax.ShapeDtypeStruct((1, B), jnp.float32),
        grid=grid,
        in_specs=[
            # obs in natural layout; ragged last block is masked by Pallas.
            pl.BlockSpec((batch_tile, obs_dim), lambda i: (i, 0)),
            const((H0, obs_dim)), const((H0, 1)),
            const((H1, H0)),      const((H1, 1)),
            const((H1, 1)),       const((1, 1)),
        ],
        out_specs=pl.BlockSpec((1, batch_tile), lambda i: (0, i)),
        compiler_params=pltpu.CompilerParams(
            dimension_semantics=("parallel",)),
    )(obs, w1_t, b1_c, w2_t, b2_c, w3_c, b3_c)

    # torch.squeeze(..., -1): value per batch element.
    return out_1xB[0]


def init_critic_params(key, obs_dim, hidden_sizes):
    """Deterministic synthetic init (shapes follow nn.Linear layers)."""
    sizes = [obs_dim] + list(hidden_sizes) + [1]
    params = []
    for fan_in, fan_out in zip(sizes[:-1], sizes[1:]):
        key, kw, kb = jax.random.split(key, 3)
        bound = 1.0 / jnp.sqrt(fan_in)
        w = jax.random.uniform(kw, (fan_in, fan_out), jnp.float32,
                               minval=-bound, maxval=bound)
        b = jax.random.uniform(kb, (1, fan_out), jnp.float32,
                               minval=-bound, maxval=bound)
        params += [w, b]
    return tuple(params)


def critic_forward_ref(obs, params):
    """Pure-JAX reference for correctness checking."""
    w1, b1, w2, b2, w3, b3 = params
    h = jnp.tanh(obs @ w1 + b1)
    h = jnp.tanh(h @ w2 + b2)
    v = h @ w3 + b3
    return jnp.squeeze(v, axis=-1)


if __name__ == "__main__":
    key = jax.random.PRNGKey(0)
    k_obs, k_obs2, k_params = jax.random.split(key, 3)

    obs_dim = 16
    hidden_sizes = (32, 64)
    params = init_critic_params(k_params, obs_dim, hidden_sizes)

    # Small rollout-style batch (single ragged tile, B < 128).
    B = 8
    obs = jax.random.normal(k_obs, (B, obs_dim), jnp.float32)
    value = jax.block_until_ready(critic_forward(obs, params))
    ref = critic_forward_ref(obs, params)
    assert value.shape == (B,), value.shape
    assert jnp.allclose(value, ref, atol=1e-5, rtol=1e-5), (value, ref)

    # Larger batch: multi-step parallel grid + ragged edge block.
    B2 = 300
    obs2 = jax.random.normal(k_obs2, (B2, obs_dim), jnp.float32)
    value2 = jax.block_until_ready(critic_forward(obs2, params))
    ref2 = critic_forward_ref(obs2, params)
    assert value2.shape == (B2,), value2.shape
    assert jnp.allclose(value2, ref2, atol=1e-5, rtol=1e-5)

    print("KERNEL_OK")
</pallas_src>

<mosaic_0001>
module attributes {stable_mosaic.version = 11 : i64} {
  func.func @critic_mlp_kernel(%arg0: i32, %arg1: memref<128x16xf32, #tpu.memory_space<vmem>>, %arg2: memref<32x16xf32, #tpu.memory_space<vmem>>, %arg3: memref<32x1xf32, #tpu.memory_space<vmem>>, %arg4: memref<64x32xf32, #tpu.memory_space<vmem>>, %arg5: memref<64x1xf32, #tpu.memory_space<vmem>>, %arg6: memref<64x1xf32, #tpu.memory_space<vmem>>, %arg7: memref<1x1xf32, #tpu.memory_space<vmem>>, %arg8: memref<1x128xf32, #tpu.memory_space<vmem>>) attributes {dimension_semantics = [#tpu.dimension_semantics<parallel>], iteration_bounds = array<i64: 1>, scalar_prefetch = 0 : i64, scratch_operands = 0 : i64, tpu.core_type = #tpu.core_type<tc>, window_params = [{transform_indices = @transform_0, window_bounds = array<i64: 128, 16>}, {pipeline_mode = #tpu.pipeline_mode<synchronous>, transform_indices = @transform_1, window_bounds = array<i64: 32, 16>}, {pipeline_mode = #tpu.pipeline_mode<synchronous>, transform_indices = @transform_2, window_bounds = array<i64: 32, 1>}, {pipeline_mode = #tpu.pipeline_mode<synchronous>, transform_indices = @transform_3, window_bounds = array<i64: 64, 32>}, {pipeline_mode = #tpu.pipeline_mode<synchronous>, transform_indices = @transform_4, window_bounds = array<i64: 64, 1>}, {pipeline_mode = #tpu.pipeline_mode<synchronous>, transform_indices = @transform_5, window_bounds = array<i64: 64, 1>}, {pipeline_mode = #tpu.pipeline_mode<synchronous>, transform_indices = @transform_6, window_bounds = array<i64: 1, 1>}, {transform_indices = @transform_7, window_bounds = array<i64: 1, 128>}]} {
    %c0 = arith.constant 0 : index
    %c0_0 = arith.constant 0 : index
    %0 = vector.load %arg1[%c0, %c0_0] : memref<128x16xf32, #tpu.memory_space<vmem>>, vector<128x16xf32>
    %c0_1 = arith.constant 0 : index
    %c0_2 = arith.constant 0 : index
    %1 = vector.load %arg2[%c0_1, %c0_2] : memref<32x16xf32, #tpu.memory_space<vmem>>, vector<32x16xf32>
    %cst = arith.constant dense<0.000000e+00> : vector<32x128xf32>
    %2 = tpu.matmul %1, %0, %cst {dimension_numbers = #tpu.dot_dimension_numbers<[1], [1], [0], [0], [0, 0, 1, 0], [], []>} : vector<32x16xf32>, vector<128x16xf32>, vector<32x128xf32> -> vector<32x128xf32>
    %c0_3 = arith.constant 0 : index
    %c0_4 = arith.constant 0 : index
    %3 = vector.load %arg3[%c0_3, %c0_4] : memref<32x1xf32, #tpu.memory_space<vmem>>, vector<32x1xf32>
    %4 = vector.broadcast %3 : vector<32x1xf32> to vector<32x128xf32>
    %5 = arith.addf %2, %4 : vector<32x128xf32>
    %6 = math.tanh %5 : vector<32x128xf32>
    %c0_5 = arith.constant 0 : index
    %c0_6 = arith.constant 0 : index
    %7 = vector.load %arg4[%c0_5, %c0_6] : memref<64x32xf32, #tpu.memory_space<vmem>>, vector<64x32xf32>
    %cst_7 = arith.constant dense<0.000000e+00> : vector<64x128xf32>
    %8 = tpu.matmul %7, %6, %cst_7 {dimension_numbers = #tpu.dot_dimension_numbers<[1], [0], [0], [1], [0, 0, 1, 1], [], []>} : vector<64x32xf32>, vector<32x128xf32>, vector<64x128xf32> -> vector<64x128xf32>
    %c0_8 = arith.constant 0 : index
    %c0_9 = arith.constant 0 : index
    %9 = vector.load %arg5[%c0_8, %c0_9] : memref<64x1xf32, #tpu.memory_space<vmem>>, vector<64x1xf32>
    %10 = vector.broadcast %9 : vector<64x1xf32> to vector<64x128xf32>
    %11 = arith.addf %8, %10 : vector<64x128xf32>
    %12 = math.tanh %11 : vector<64x128xf32>
    %c0_10 = arith.constant 0 : index
    %c0_11 = arith.constant 0 : index
    %13 = vector.load %arg6[%c0_10, %c0_11] : memref<64x1xf32, #tpu.memory_space<vmem>>, vector<64x1xf32>
    %14 = vector.broadcast %13 : vector<64x1xf32> to vector<64x128xf32>
    %15 = arith.mulf %12, %14 : vector<64x128xf32>
    %cst_12 = arith.constant dense<0.000000e+00> : vector<128xf32>
    %16 = vector.multi_reduction <add>, %15, %cst_12 [0] : vector<64x128xf32> to vector<128xf32>
    %17 = vector.shape_cast %16 : vector<128xf32> to vector<1x128xf32>
    %c0_13 = arith.constant 0 : index
    %c0_14 = arith.constant 0 : index
    %18 = vector.load %arg7[%c0_13, %c0_14] : memref<1x1xf32, #tpu.memory_space<vmem>>, vector<1x1xf32>
    %19 = vector.broadcast %18 : vector<1x1xf32> to vector<1x128xf32>
    %20 = arith.addf %17, %19 : vector<1x128xf32>
    %c0_15 = arith.constant 0 : index
    %c0_16 = arith.constant 0 : index
    %21 = vector.load %arg8[%c0_15, %c0_16] : memref<1x128xf32, #tpu.memory_space<vmem>>, vector<1x128xf32>
    tpu.vector_store %arg8[%c0_15, %c0_16], %20 {strides = array<i32>} : memref<1x128xf32, #tpu.memory_space<vmem>>, vector<1x128xf32>,
    return
  }
  func.func @transform_0(%arg0: i32) -> (i32, i32) {
    %c0_i32 = arith.constant 0 : i32
    %c0_i32_0 = arith.constant 0 : i32
    return %arg0, %c0_i32 : i32, i32
  }
  func.func @transform_1(%arg0: i32) -> (i32, i32) {
    %c0_i32 = arith.constant 0 : i32
    %c0_i32_0 = arith.constant 0 : i32
    %c0_i32_1 = arith.constant 0 : i32
    return %c0_i32, %c0_i32_0 : i32, i32
  }
  func.func @transform_2(%arg0: i32) -> (i32, i32) {
    %c0_i32 = arith.constant 0 : i32
    %c0_i32_0 = arith.constant 0 : i32
    %c0_i32_1 = arith.constant 0 : i32
    return %c0_i32, %c0_i32_0 : i32, i32
  }
  func.func @transform_3(%arg0: i32) -> (i32, i32) {
    %c0_i32 = arith.constant 0 : i32
    %c0_i32_0 = arith.constant 0 : i32
    %c0_i32_1 = arith.constant 0 : i32
    return %c0_i32, %c0_i32_0 : i32, i32
  }
  func.func @transform_4(%arg0: i32) -> (i32, i32) {
    %c0_i32 = arith.constant 0 : i32
    %c0_i32_0 = arith.constant 0 : i32
    %c0_i32_1 = arith.constant 0 : i32
    return %c0_i32, %c0_i32_0 : i32, i32
  }
  func.func @transform_5(%arg0: i32) -> (i32, i32) {
    %c0_i32 = arith.constant 0 : i32
    %c0_i32_0 = arith.constant 0 : i32
    %c0_i32_1 = arith.constant 0 : i32
    return %c0_i32, %c0_i32_0 : i32, i32
  }
  func.func @transform_6(%arg0: i32) -> (i32, i32) {
    %c0_i32 = arith.constant 0 : i32
    %c0_i32_0 = arith.constant 0 : i32
    %c0_i32_1 = arith.constant 0 : i32
    return %c0_i32, %c0_i32_0 : i32, i32
  }
  func.func @transform_7(%arg0: i32) -> (i32, i32) {
    %c0_i32 = arith.constant 0 : i32
    %c0_i32_0 = arith.constant 0 : i32
    return %c0_i32, %arg0 : i32, i32
  }
}

</mosaic_0001>

<bundles_post_ra>
// kernel: tpu_custom_call.1
= control target key start
LH: loop header
LB: loop body
LE: loop exit
PB: predicated region body
PF: predicated region fallthrough
CT: control target
= control target key end

     0   :  { %s758_s0 = inlined_call_operand.vmem [shape: f32[8,16], index: 0, kind: input, shape index: {}]   ;;  %s759_s1 = inlined_call_operand.vmem [shape: f32[32,16], index: 1, kind: input, shape index: {}]   ;;  %s760_s2 = inlined_call_operand.vmem [shape: f32[32,1], index: 2, kind: input, shape index: {}]   ;;  %s761_s3 = inlined_call_operand.vmem [shape: f32[64,32], index: 3, kind: input, shape index: {}]   ;;  %s762_s4 = inlined_call_operand.vmem [shape: f32[64,1], index: 4, kind: input, shape index: {}]   ;;  %s763_s5 = inlined_call_operand.vmem [shape: f32[64,1], index: 5, kind: input, shape index: {}]   ;;  %s764_s6 = inlined_call_operand.<no memory space> [shape: f32[1,1], index: 6, kind: input, shape index: {}]   ;;  %s765_s7 = inlined_call_operand.hbm [shape: f32[1,8], index: 7, kind: output, shape index: {}]  }
   0x1   :  { %v12_v0 = vstv %s764_s6 }
   0x2   :  { %13 = vst [vmem:[#allocation2] sm:$0x1] %v12_v0 }
   0x3   :  { %v44_v1 = vld [vmem:[%s758_s0 + $0x78] sm:$0xff]  ;;  %vm73_vm0 = vcmask 130048   ;;  %v43_v2 = vld [vmem:[%s758_s0 + $0x70] sm:$0xff]  ;;  %v506_v3 = vmov 0  }
   0x4   :  { %420 = vmatpush.xpose.msk.msra.mxu3 %vm73_vm0, %v44_v1  ;;  %419 = vmatpush.xpose.msk.msra.mxu2 %vm73_vm0, %v44_v1  ;;  %v52_v4 = vld [vmem:[%s760_s2 + $0x18] sm:$0xff] }
   0x5   :  { %391 = vmatpush.xpose.msk.msra.mxu0 %vm73_vm0, %v44_v1  ;;  %453 = vset.pattern.permute.xlu0 %v506_v3 }
   0x6   :  { %454 = vset.pattern.permute.xlu1 %v506_v3  ;;  %455 = vset.pattern.permute.xlu2 %v506_v3 }
   0x7   :  { %14 = vsyncpa [#allocation4], 0  ;;  %70 = vperm.xlu0 %453, %v52_v4   ;;  %v50_v5 = vld [vmem:[%s760_s2 + $0x8] sm:$0xff]  ;;  %v51_v7 = vld [vmem:[%s760_s2 + $0x10] sm:$0xff]  ;;  %vm223_vm1 = vcmask 261120   ;;  %s382_s21 = sshll.u32 %s765_s7, 4  ;;  %s383_s21 = int_to_ptr.hbm [resolvable:$true] %s382_s21 }
   0x8   :  { %422 = vmatpush.xpose.msk.msra.mxu3 %vm73_vm0, %v43_v2  ;;  %421 = vmatpush.xpose.msk.msra.mxu2 %vm73_vm0, %v43_v2  ;;  %v42_v6 = vld [vmem:[%s758_s0 + $0x68] sm:$0xff]  ;;  %v41_v8 = vld [vmem:[%s758_s0 + $0x60] sm:$0xff]  ;;  %v40_v10 = vld [vmem:[%s758_s0 + $0x58] sm:$0xff] }
   0x9   :  { %392 = vmatpush.xpose.msk.msra.mxu0 %vm73_vm0, %v43_v2  ;;  %60 = vperm.xlu1 %454, %v50_v5   ;;  %v49_v9 = vld [vmem:[%s760_s2] sm:$0xff]  ;;  %v177_v11 = vld [vmem:[%s762_s4 + $0x10] sm:$0xff]  ;;  %v178_v13 = vld [vmem:[%s762_s4 + $0x18] sm:$0xff] }
   0xa   :  { %v39_v12 = vld [vmem:[%s758_s0 + $0x50] sm:$0xff]  ;;  %v38_v14 = vld [vmem:[%s758_s0 + $0x48] sm:$0xff]  ;;  %v37_v16 = vld [vmem:[%s758_s0 + $0x40] sm:$0xff] }
   0xb   :  { %v180_v15 = vld [vmem:[%s762_s4 + $0x28] sm:$0xff]  ;;  %v297_v17 = vld [vmem:[%s763_s5] sm:$0xff]  ;;  %v36_v18 = vld [vmem:[%s758_s0 + $0x38] sm:$0xff] }
   0xc   :  { %424 = vmatpush.xpose.msk.msra.mxu3 %vm73_vm0, %v42_v6  ;;  %423 = vmatpush.xpose.msk.msra.mxu2 %vm73_vm0, %v42_v6  ;;  %v181_v19 = vld [vmem:[%s762_s4 + $0x30] sm:$0xff]  ;;  %v34_v22 = vld [vmem:[%s758_s0 + $0x28] sm:$0xff]  ;;  %v300_v23 = vld [vmem:[%s763_s5 + $0x18] sm:$0xff] }
   0xd   :  { %393 = vmatpush.xpose.msk.msra.mxu0 %vm73_vm0, %v42_v6  ;;  %v35_v20 = vld [vmem:[%s758_s0 + $0x30] sm:$0xff]  ;;  %v33_v24 = vld [vmem:[%s758_s0 + $0x20] sm:$0xff]  ;;  %v32_v26 = vld [vmem:[%s758_s0 + $0x18] sm:$0xff] }
   0xe   :  { %v299_v21 = vld [vmem:[%s763_s5 + $0x10] sm:$0xff]  ;;  %v301_v25 = vld [vmem:[%s763_s5 + $0x20] sm:$0xff]  ;;  %v304_v29 = vld [vmem:[%s763_s5 + $0x38] sm:$0xff] }
   0xf   :  { %65 = vperm.xlu0 %453, %v51_v7   ;;  %v303_v27 = vld [vmem:[%s763_s5 + $0x30] sm:$0xff]  ;;  %v30_v30 = vld [vmem:[%s758_s0 + $0x8] sm:$0xff]  ;;  %v29_v31 = vld [vmem:[%s758_s0] sm:$0xff] }
  0x10   :  { %426 = vmatpush.xpose.msk.msra.mxu3 %vm73_vm0, %v41_v8  ;;  %425 = vmatpush.xpose.msk.msra.mxu2 %vm73_vm0, %v41_v8  ;;  %v31_v28 = vld [vmem:[%s758_s0 + $0x10] sm:$0xff]  ;;  %v46_v33 = vld [vmem:[%s759_s1 + $0x8] sm:$0xff]  ;;  %v45_v34 = vld [vmem:[%s759_s1] sm:$0xff] }
  0x11   :  { %394 = vmatpush.xpose.msk.msra.mxu0 %vm73_vm0, %v41_v8  ;;  %55 = vperm.xlu1 %454, %v49_v9   ;;  %v47_v32 = vld [vmem:[%s759_s1 + $0x10] sm:$0xff]  ;;  %v48_v35 = vld [vmem:[%s759_s1 + $0x18] sm:$0xff]  ;;  %v175_v36 = vld [vmem:[%s762_s4] sm:$0xff] }
  0x12   :  { %185 = vperm.xlu2 %455, %v175_v36   ;;  %v176_v39 = vld [vmem:[%s762_s4 + $0x8] sm:$0xff]  ;;  %v179_v46 = vld [vmem:[%s762_s4 + $0x20] sm:$0xff]  ;;  %v182_v57 = vld [vmem:[%s762_s4 + $0x38] sm:$0xff] }
  0x13   :  { %v298_v52 = vld [vmem:[%s763_s5 + $0x8] sm:$0xff]  ;;  %v167_v55 = vld [vmem:[%s761_s3] sm:$0xff]  ;;  %v169_v60 = vld [vmem:[%s761_s3 + $0x10] sm:$0xff] }
  0x14   :  { %428 = vmatpush.xpose.msk.msra.mxu3 %vm73_vm0, %v40_v10  ;;  %427 = vmatpush.xpose.msk.msra.mxu2 %vm73_vm0, %v40_v10  ;;  %v168_v58 = vld [vmem:[%s761_s3 + $0x8] sm:$0xff]  ;;  %v366_v61 = vld [vmem:[#allocation2] sm:$0x1]  ;;  %v170_v62 = vld [vmem:[%s761_s3 + $0x18] sm:$0xff] }
  0x15   :  { %395 = vmatpush.xpose.msk.msra.mxu0 %vm73_vm0, %v40_v10  ;;  %v302_v59 = vld [vmem:[%s763_s5 + $0x28] sm:$0xff]  ;;  %v171_v63 = vld [vmem:[%s761_s3 + $0x20] sm:$0xff]  ;;  %v173_v1 = vld [vmem:[%s761_s3 + $0x30] sm:$0xff] }
  0x16   :  { %v172_v0 = vld [vmem:[%s761_s3 + $0x28] sm:$0xff]  ;;  %v174_v2 = vld [vmem:[%s761_s3 + $0x38] sm:$0xff]  ;;  %s507_s3 = smov [#allocation3]  }
  0x17   :  { %195 = vperm.xlu0 %453, %v177_v11   ;;  %s380_s18 = sshll.u32 %s507_s3, 4  ;;  %s381_s18 = int_to_ptr.vmem [resolvable:$true] %s380_s18 }
  0x18   :  { %430 = vmatpush.xpose.msk.msra.mxu3 %vm73_vm0, %v39_v12  ;;  %429 = vmatpush.xpose.msk.msra.mxu2 %vm73_vm0, %v39_v12 }
  0x19   :  { %396 = vmatpush.xpose.msk.msra.mxu0 %vm73_vm0, %v39_v12  ;;  %200 = vperm.xlu1 %454, %v178_v13  }
  0x1a   :  { %190 = vperm.xlu2 %455, %v176_v39  }
  0x1c   :  { %432 = vmatpush.xpose.msk.msra.mxu3 %vm73_vm0, %v38_v14  ;;  %431 = vmatpush.xpose.msk.msra.mxu2 %vm73_vm0, %v38_v14 }
  0x1d   :  { %397 = vmatpush.xpose.msk.msra.mxu0 %vm73_vm0, %v38_v14 }
  0x1f   :  { %210 = vperm.xlu0 %453, %v180_v15  }
  0x20   :  { %434 = vmatpush.xpose.msk.msra.mxu3 %vm73_vm0, %v37_v16  ;;  %433 = vmatpush.xpose.msk.msra.mxu2 %vm73_vm0, %v37_v16 }
  0x21   :  { %398 = vmatpush.xpose.msk.msra.mxu0 %vm73_vm0, %v37_v16  ;;  %307 = vperm.xlu1 %454, %v297_v17  }
  0x22   :  { %205 = vperm.xlu2 %455, %v179_v46  }
  0x24   :  { %436 = vmatpush.xpose.msk.msra.mxu3 %vm73_vm0, %v36_v18  ;;  %435 = vmatpush.xpose.msk.msra.mxu2 %vm73_vm0, %v36_v18 }
  0x25   :  { %399 = vmatpush.xpose.msk.msra.mxu0 %vm73_vm0, %v36_v18 }
  0x27   :  { %215 = vperm.xlu0 %453, %v181_v19  }
  0x28   :  { %438 = vmatpush.xpose.msk.msra.mxu3 %vm73_vm0, %v35_v20  ;;  %437 = vmatpush.xpose.msk.msra.mxu2 %vm73_vm0, %v35_v20 }
  0x29   :  { %400 = vmatpush.xpose.msk.msra.mxu0 %vm73_vm0, %v35_v20  ;;  %317 = vperm.xlu1 %454, %v299_v21  }
  0x2a   :  { %312 = vperm.xlu2 %455, %v298_v52  }
  0x2c   :  { %440 = vmatpush.xpose.msk.msra.mxu3 %vm73_vm0, %v34_v22  ;;  %439 = vmatpush.xpose.msk.msra.mxu2 %vm73_vm0, %v34_v22 }
  0x2d   :  { %401 = vmatpush.xpose.msk.msra.mxu0 %vm73_vm0, %v34_v22 }
  0x2f   :  { %322 = vperm.xlu0 %453, %v300_v23  }
  0x30   :  { %442 = vmatpush.xpose.msk.msra.mxu3 %vm73_vm0, %v33_v24  ;;  %441 = vmatpush.xpose.msk.msra.mxu2 %vm73_vm0, %v33_v24 }
  0x31   :  { %402 = vmatpush.xpose.msk.msra.mxu0 %vm73_vm0, %v33_v24  ;;  %327 = vperm.xlu1 %454, %v301_v25  }
  0x32   :  { %220 = vperm.xlu2 %455, %v182_v57  }
  0x34   :  { %444 = vmatpush.xpose.msk.msra.mxu3 %vm73_vm0, %v32_v26  ;;  %443 = vmatpush.xpose.msk.msra.mxu2 %vm73_vm0, %v32_v26 }
  0x35   :  { %403 = vmatpush.xpose.msk.msra.mxu0 %vm73_vm0, %v32_v26 }
  0x37   :  { %337 = vperm.xlu0 %453, %v303_v27  }
  0x38   :  { %446 = vmatpush.xpose.msk.msra.mxu3 %vm73_vm0, %v31_v28  ;;  %445 = vmatpush.xpose.msk.msra.mxu2 %vm73_vm0, %v31_v28 }
  0x39   :  { %404 = vmatpush.xpose.msk.msra.mxu0 %vm73_vm0, %v31_v28  ;;  %342 = vperm.xlu1 %454, %v304_v29  }
  0x3a   :  { %332 = vperm.xlu2 %455, %v302_v59  }
  0x3c   :  { %448 = vmatpush.xpose.msk.msra.mxu3 %vm73_vm0, %v30_v30  ;;  %447 = vmatpush.xpose.msk.msra.mxu2 %vm73_vm0, %v30_v30 }
  0x3d   :  { %405 = vmatpush.xpose.msk.msra.mxu0 %vm73_vm0, %v30_v30 }
  0x40   :  { %450 = vmatpush.xpose.msk.msra.mxu3 %vm73_vm0, %v29_v31  ;;  %449 = vmatpush.xpose.msk.msra.mxu2 %vm73_vm0, %v29_v31 }
  0x41   :  { %406 = vmatpush.xpose.msk.msra.mxu0 %vm73_vm0, %v29_v31 }
  0x42   :  { %369 = vperm.xlu2 %455, %v366_v61  }
  0x43   :  { %409 = vmatmul.msk.f32.vlgmr.msra.gmra.mxu3 %vm73_vm0, %v47_v32  ;;  %408 = vmatmul.msk.f32.vlgmr.msra.gmra.mxu2 %vm73_vm0, %v46_v33 }
  0x44   :  { %407 = vmatmul.msk.f32.vlgmr.msra.gmra.mxu0 %vm73_vm0, %v45_v34 }
  0x4b   :  { %410 = vmatmul.msk.f32.gmra.mxu3 %vm73_vm0, %v48_v35 }
  0x6c   :  { %v186_v5 = vpop.permute.xlu2 %185 }
  0x74   :  { %v191_v7 = vpop.permute.xlu2 %190 }
  0x79   :  { %v71_v37 = vpop.permute.xlu0 %70 }
  0x7b   :  { %v61_v40 = vpop.permute.xlu1 %60 }
  0x7c   :  { %v206_v11 = vpop.permute.xlu2 %205 }
  0x81   :  { %v66_v41 = vpop.permute.xlu0 %65 }
  0x83   :  { %v56_v49 = vpop.permute.xlu1 %55 }
  0x84   :  { %v313_v15 = vpop.permute.xlu2 %312 }
  0x89   :  { %v196_v8 = vpop.permute.xlu0 %195 }
  0x8b   :  { %v201_v10 = vpop.permute.xlu1 %200 }
  0x8c   :  { %v221_v27 = vpop.permute.xlu2 %220 }
  0x91   :  { %v211_v12 = vpop.permute.xlu0 %210 }
  0x93   :  { %v308_v14 = vpop.permute.xlu1 %307 }
  0x94   :  { %v333_v46 = vpop.permute.xlu2 %332 }
  0x99   :  { %v216_v19 = vpop.permute.xlu0 %215 }
  0x9b   :  { %v318_v22 = vpop.permute.xlu1 %317 }
  0xa1   :  { %v323_v31 = vpop.permute.xlu0 %322 }
  0xc1   :  { %v151_v47 = vpop.f32.mrf.mxu0 }
  0xc2   :  { %v152_v50 = vadd.f32 %v151_v47, %v56_v49  ;;  %v338_v49 = vpop.permute.xlu0 %337 }
  0xc6   :  { %v157_v38 = vpop.f32.mrf.mxu3  ;;  %v154_v42 = vpop.f32.mrf.mxu2 }
  0xc7   :  { %v158_v44 = vadd.f32 %v157_v38, %v66_v41  ;;  %v155_v48 = vadd.f32 %v154_v42, %v61_v40 }
  0xce   :  { %v160_v43 = vpop.f32.mrf.mxu3 }
  0xcf   :  { %v161_v45 = vadd.f32 %v160_v43, %v71_v37  ;;  %v328_v37 = vpop.permute.xlu1 %327 }
  0xd1   :  { %456 = vtanh.f32 %v161_v45 }
  0xd2   :  { %458 = vtanh.f32 %v158_v44 }
  0xd3   :  { %460 = vtanh.f32 %v155_v48 }
  0xd4   :  { %462 = vtanh.f32 %v152_v50 }
  0xd7   :  { %v457_v51 = vpop.eup %456 }
  0xd8   :  { %260 = vmatpush.msra.mxu1 %v457_v51  ;;  %v459_v53 = vpop.eup %458 }
  0xd9   :  { %v461_v54 = vpop.eup %460 }
  0xda   :  { %261 = vmatpush.msra.mxu1 %v459_v53  ;;  %v463_v56 = vpop.eup %462 }
  0xdc   :  { %262 = vmatpush.msra.mxu1 %v461_v54  ;;  %v343_v54 = vpop.permute.xlu1 %342 }
  0xde   :  { %263 = vmatpush.msra.mxu1 %v463_v56 }
  0xdf   :  { %411 = vmatmul.msk.f32.vlgmr.msra.gmra.mxu1 %vm223_vm1, %v167_v55 }
  0xe7   :  { %412 = vmatmul.msk.f32.gmra.mxu1 %vm223_vm1, %v168_v58 }
  0xef   :  { %413 = vmatmul.msk.f32.gmra.mxu1 %vm223_vm1, %v169_v60 }
  0xf7   :  { %414 = vmatmul.msk.f32.gmra.mxu1 %vm223_vm1, %v170_v62  ;;  %v370_v62 = vpop.permute.xlu2 %369 }
  0xff   :  { %415 = vmatmul.msk.f32.gmra.mxu1 %vm223_vm1, %v171_v63 }
 0x107   :  { %416 = vmatmul.msk.f32.gmra.mxu1 %vm223_vm1, %v172_v0  ;;  %v372_v0 = vperm.slane %v370_v62, 0 }
 0x10f   :  { %417 = vmatmul.msk.f32.gmra.mxu1 %vm223_vm1, %v173_v1 }
 0x117   :  { %418 = vmatmul.msk.f32.gmra.mxu1 %vm223_vm1, %v174_v2 }
 0x15c   :  { %v265_v3 = vpop.f32.mrf.mxu1 }
 0x15d   :  { %v266_v17 = vadd.f32 %v265_v3, %v186_v5 }
 0x164   :  { %v268_v4 = vpop.f32.mrf.mxu1 }
 0x165   :  { %v269_v16 = vadd.f32 %v268_v4, %v191_v7 }
 0x167   :  { %464 = vtanh.f32 %v269_v16 }
 0x168   :  { %466 = vtanh.f32 %v266_v17 }
 0x16c   :  { %v271_v6 = vpop.f32.mrf.mxu1 }
 0x16d   :  { %v272_v20 = vadd.f32 %v271_v6, %v196_v8  ;;  %v465_v26 = vpop.eup %464 }
 0x16e   :  { %v467_v29 = vpop.eup %466  ;;  %v346_v32 = vmul.f32 %v465_v26, %v313_v15 }
 0x16f   :  { %468 = vtanh.f32 %v272_v20  ;;  %v345_v34 = vmul.f32 %v467_v29, %v308_v14 }
 0x171   :  { %v353_v38 = vadd.f32 %v346_v32, %v345_v34 }
 0x174   :  { %v274_v9 = vpop.f32.mrf.mxu1 }
 0x175   :  { %v275_v21 = vadd.f32 %v274_v9, %v201_v10  ;;  %v469_v30 = vpop.eup %468 }
 0x176   :  { %v347_v35 = vmul.f32 %v469_v30, %v318_v22 }
 0x177   :  { %470 = vtanh.f32 %v275_v21 }
 0x178   :  { %v354_v43 = vadd.f32 %v353_v38, %v347_v35 }
 0x17c   :  { %v277_v13 = vpop.f32.mrf.mxu1 }
 0x17d   :  { %v278_v23 = vadd.f32 %v277_v13, %v206_v11  ;;  %v471_v33 = vpop.eup %470 }
 0x17e   :  { %v348_v39 = vmul.f32 %v471_v33, %v323_v31 }
 0x17f   :  { %472 = vtanh.f32 %v278_v23 }
 0x180   :  { %v355_v47 = vadd.f32 %v354_v43, %v348_v39 }
 0x184   :  { %v280_v18 = vpop.f32.mrf.mxu1 }
 0x185   :  { %v281_v24 = vadd.f32 %v280_v18, %v211_v12  ;;  %v473_v36 = vpop.eup %472 }
 0x186   :  { %v349_v44 = vmul.f32 %v473_v36, %v328_v37 }
 0x187   :  { %474 = vtanh.f32 %v281_v24 }
 0x188   :  { %v356_v50 = vadd.f32 %v355_v47, %v349_v44 }
 0x18c   :  { %v283_v25 = vpop.f32.mrf.mxu1 }
 0x18d   :  { %v284_v28 = vadd.f32 %v283_v25, %v216_v19  ;;  %v475_v41 = vpop.eup %474 }
 0x18e   :  { %v350_v48 = vmul.f32 %v475_v41, %v333_v46 }
 0x18f   :  { %476 = vtanh.f32 %v284_v28 }
 0x190   :  { %v357_v52 = vadd.f32 %v356_v50, %v350_v48 }
 0x194   :  { %v286_v40 = vpop.f32.mrf.mxu1 }
 0x195   :  { %v287_v42 = vadd.f32 %v286_v40, %v221_v27  ;;  %v477_v45 = vpop.eup %476 }
 0x196   :  { %v351_v51 = vmul.f32 %v477_v45, %v338_v49 }
 0x197   :  { %478 = vtanh.f32 %v287_v42 }
 0x198   :  { %v358_v55 = vadd.f32 %v357_v52, %v351_v51 }
 0x19d   :  { %v479_v53 = vpop.eup %478 }
 0x19e   :  { %v352_v56 = vmul.f32 %v479_v53, %v343_v54 }
 0x1a0   :  { %v359_v57 = vadd.f32 %v358_v55, %v352_v56 }
 0x1a2   :  { %v360_v58 = vrot.slane %v359_v57, 4 }
 0x1a4   :  { %v361_v59 = vadd.f32 %v360_v58, %v359_v57 }
 0x1a6   :  { %v362_v60 = vrot.slane %v361_v59, 2 }
 0x1a8   :  { %v363_v61 = vadd.f32 %v362_v60, %v361_v59 }
 0x1aa   :  { %v364_v63 = vrot.slane %v363_v61, 1 }
 0x1ac   :  { %v365_v1 = vadd.f32 %v364_v63, %v363_v61 }
 0x1ae   :  { %v373_v2 = vadd.f32 %v372_v0, %v365_v1 }
 0x1b0   :  { %374 = vst [vmem:[#allocation3] sm:$0x1] %v373_v2 }
 0x1b1   :  { %385 = dma.vmem_to_hbm [thread:$0]  %s381_s18, 16, %s383_s21, [#allocation4]  }
 0x1b2   :  { %504 = dma.done.wait [#allocation4], 16  }
 0x1b3   :  { %505 = vsyncadd [#allocation4], 4294967280 }
 0x1b4   :  { %390 = vsyncpa [#allocation4], 1 }

</bundles_post_ra>
